<compile_context>
chip_gen: v7x
topology: tpu7x:2x2x1
jax: 0.10.0
libtpu: 0.0.40
codegen_flags: <defaults>
</compile_context>

<pallas_src>
from functools import partial

import jax
import jax.numpy as jnp
from jax import lax
from jax.experimental import pallas as pl
from jax.experimental.pallas import tpu as pltpu

_LN_EPS = 1e-5


def _round_up(n, m):
    return ((n + m - 1) // m) * m


def _fused_cheby2_kan_kernel(*refs, in_dims, degree):
    # refs = (x_ref, wp_ref_0 .. wp_ref_{L-1}, o_ref, u_scratch)
    num_layers = len(in_dims)
    x_ref = refs[0]
    wp_refs = refs[1:1 + num_layers]
    o_ref = refs[1 + num_layers]
    u_ref = refs[2 + num_layers]          # VMEM scratch: (degree * I_max, bt) f32

    h = x_ref[...].astype(jnp.float32)    # (I0, bt)  -- batch on lanes
    for l in range(num_layers):
        I = in_dims[l]
        K = degree * I
        wp = wp_refs[l]                   # (O, K + 3) = [W^T | bias0 | gamma | beta]
        O = wp.shape[0]

        # Chebyshev-2 basis U_1..U_degree of tanh(h); U_0 (== 1) is folded into bias0.
        t = jnp.tanh(h)
        two_t = t + t                     # hoisted 2*x
        u_ref[0:I, :] = two_t             # U_1 = 2x   (sublane-tile aligned row block)
        u_p = two_t
        if degree >= 2:
            u = two_t * u_p - 1.0         # U_2 = 2x*U_1 - U_0, U_0 == 1 (scalar)
            u_ref[I:2 * I, :] = u
            u_pp, u_p = u_p, u
            for d in range(3, degree + 1):
                u = two_t * u_p - u_pp    # U_d = 2x*U_{d-1} - U_{d-2}
                u_ref[(d - 1) * I:d * I, :] = u
                u_pp, u_p = u_p, u

        w = wp[:, 0:K]                    # (O, deg*I)
        b0 = wp[:, K:K + 1]               # (O, 1)   sum_i coeffs[i, o, 0]
        g = wp[:, K + 1:K + 2]            # (O, 1)   LayerNorm weight
        be = wp[:, K + 2:K + 3]           # (O, 1)   LayerNorm bias

        # einsum('bid,iod->bo') (transposed):  acc = W^T @ U_cat^T + bias0  -> (O, bt)
        acc = jnp.dot(w, u_ref[0:K, :], preferred_element_type=jnp.float32) + b0

        # LayerNorm over the feature (sublane) axis; reductions via ones-matmul on the MXU.
        inv_o = jnp.full((1, O), 1.0 / O, dtype=jnp.float32)
        mean = jnp.dot(inv_o, acc, preferred_element_type=jnp.float32)           # (1, bt)
        centered = acc - mean
        var = jnp.dot(inv_o, centered * centered,
                      preferred_element_type=jnp.float32)                        # (1, bt)
        h = centered * lax.rsqrt(var + _LN_EPS) * g + be

    o_ref[...] = h.astype(o_ref.dtype)


def chebyshev2_kan_forward(x, kernel_params, *, degree, batch_tile=2048):
    """kernel_params[l]: packed (O, degree*I + 3) = [W^T | bias0 | gamma | beta]."""
    assert degree >= 1
    num_layers = len(kernel_params)
    in_dims = [(int(p.shape[1]) - 3) // degree for p in kernel_params]
    out_dims = [int(p.shape[0]) for p in kernel_params]
    in_dim0, out_last = in_dims[0], out_dims[-1]
    k_max = degree * max(in_dims)

    h2 = jnp.reshape(x, (-1, in_dim0))    # torch.reshape(x, (-1, input_dim))
    batch = h2.shape[0]
    xt = h2.T                             # (in_dim0, batch): feature-major, batch on lanes

    # --- batch-tile selection -------------------------------------------------
    if batch <= 256:
        bt = batch                        # single block == full array (tiling rule exempt)
    else:
        # multiple of 128 (lane-axis rule), at least 2 grid steps (v7x has 2 TensorCores)
        target = max(128, min(int(batch_tile), _round_up(pl.cdiv(batch, 2), 128)))
        bt = _round_up(target, 128)

    def _est_vmem_bytes(bt_):
        i_max, o_max = max(in_dims), max(out_dims)
        per_lane = 4 * (2 * in_dim0       # double-buffered x block
                        + k_max           # u_cat scratch
                        + 6 * i_max       # h, t, two_t, u, u_p, u_pp
                        + 4 * o_max       # acc, centered, slack
                        + 2 * out_last)   # double-buffered out block
        w_bytes = 2 * 4 * sum(int(p.size) for p in kernel_params)
        return per_lane * bt_ + w_bytes + (1 << 20)

    budget = 36 * 2**20                   # keep well under v7x's 64 MiB physical VMEM
    while bt > 256 and _est_vmem_bytes(bt) > budget:
        bt = max(128, _round_up(bt // 2, 128))
    grid = pl.cdiv(batch, bt)
    vmem_limit = int(min(48 * 2**20, max(16 * 2**20, _est_vmem_bytes(bt) + (8 << 20))))

    # --- pallas_call ----------------------------------------------------------
    in_specs = [pl.BlockSpec((in_dim0, bt), lambda i: (0, i))]
    for p in kernel_params:
        in_specs.append(pl.BlockSpec(p.shape, lambda i: (0, 0)))   # VMEM-resident weights

    out_t = pl.pallas_call(
        partial(_fused_cheby2_kan_kernel, in_dims=tuple(in_dims), degree=degree),
        out_shape=jax.ShapeDtypeStruct((out_last, batch), x.dtype),
        grid_spec=pltpu.PrefetchScalarGridSpec(
            num_scalar_prefetch=0,
            grid=(grid,),
            in_specs=in_specs,
            out_specs=pl.BlockSpec((out_last, bt), lambda i: (0, i)),
            scratch_shapes=[pltpu.VMEM((k_max, bt), jnp.float32)],
        ),
        compiler_params=pltpu.CompilerParams(
            dimension_semantics=("parallel",),
            vmem_limit_bytes=vmem_limit),
    )(xt, *kernel_params)
    return out_t.T                        # back to (batch, out_dim_last)


def init_params(key, layers_hidden, degree):
    """Deterministic synthetic parameters matching the PyTorch module shapes.

    Returns (kernel_params, ref_params):
      kernel_params[l] = packed (O, degree*I + 3) = [W^T | bias0 | gamma | beta]
                         with W^T[o, (d-1)*I + i] = coeffs[i, o, d] for d = 1..degree
      ref_params[l]    = (coeffs (I, O, degree+1), gamma (O,), beta (O,))   # PyTorch layout
    """
    kernel_params, ref_params = [], []
    for in_dim, out_dim in zip(layers_hidden[:-1], layers_hidden[1:]):
        key, sub = jax.random.split(key)
        std = 1.0 / (in_dim * (degree + 1))
        coeffs = jax.random.normal(sub, (in_dim, out_dim, degree + 1),
                                   dtype=jnp.float32) * std
        gamma = jnp.ones((out_dim,), jnp.float32)    # LayerNorm weight
        beta = jnp.zeros((out_dim,), jnp.float32)    # LayerNorm bias
        ref_params.append((coeffs, gamma, beta))

        wt = jnp.transpose(coeffs, (1, 2, 0))[:, 1:, :].reshape(
            out_dim, degree * in_dim)                             # (O, deg*I)
        bias0 = jnp.sum(coeffs[:, :, 0], axis=0)[:, None]         # (O, 1)  U_0 fold
        packed = jnp.concatenate(
            [wt, bias0, gamma[:, None], beta[:, None]], axis=1)   # (O, deg*I + 3)
        kernel_params.append(packed)
    return kernel_params, ref_params


def _reference_forward(x, ref_params, degree):
    """Pure-JAX reference of the PyTorch module for the correctness check."""
    h = jnp.reshape(x, (-1, ref_params[0][0].shape[0])).astype(jnp.float32)
    for coeffs, gamma, beta in ref_params:
        t = jnp.tanh(h)
        basis = [jnp.ones_like(t)]
        if degree > 0:
            basis.append(2.0 * t)
        for _ in range(2, degree + 1):
            basis.append(2.0 * t * basis[-1] - basis[-2])
        cheb = jnp.stack(basis, axis=-1)                          # (B, I, D+1)
        y = jnp.einsum('bid,iod->bo', cheb, coeffs)
        mean = jnp.mean(y, axis=-1, keepdims=True)
        var = jnp.mean(jnp.square(y - mean), axis=-1, keepdims=True)
        h = (y - mean) * lax.rsqrt(var + _LN_EPS) * gamma + beta
    return h


if __name__ == "__main__":
    key = jax.random.PRNGKey(0)
    degree = 4
    layers_hidden = [32, 64, 16]

    k_in, k_in2, k_par = jax.random.split(key, 3)
    kernel_params, ref_params = init_params(k_par, layers_hidden, degree)

    # Case 1: small batch (flattens to (10, 32)) -> single full block, grid = 1.
    x = jax.random.normal(k_in, (2, 5, 32), dtype=jnp.float32)
    out = jax.block_until_ready(chebyshev2_kan_forward(x, kernel_params, degree=degree))
    ref = _reference_forward(x, ref_params, degree)
    assert out.shape == (10, layers_hidden[-1]), out.shape
    assert jnp.allclose(out, ref, atol=1e-4, rtol=1e-4), \
        float(jnp.max(jnp.abs(out - ref)))

    # Case 2: batch = 400 -> bt = 256, grid = 2 with a ragged (masked) last block.
    x2 = jax.random.normal(k_in2, (400, 32), dtype=jnp.float32)
    out2 = jax.block_until_ready(chebyshev2_kan_forward(x2, kernel_params, degree=degree))
    ref2 = _reference_forward(x2, ref_params, degree)
    assert out2.shape == (400, layers_hidden[-1]), out2.shape
    assert jnp.allclose(out2, ref2, atol=1e-4, rtol=1e-4), \
        float(jnp.max(jnp.abs(out2 - ref2)))

    print("KERNEL_OK")
</pallas_src>

<mosaic_0001>
module attributes {stable_mosaic.version = 11 : i64} {
  func.func @_fused_cheby2_kan_kernel(%arg0: i32, %arg1: memref<32x10xf32, #tpu.memory_space<vmem>>, %arg2: memref<64x131xf32, #tpu.memory_space<vmem>>, %arg3: memref<16x259xf32, #tpu.memory_space<vmem>>, %arg4: memref<16x10xf32, #tpu.memory_space<vmem>>, %arg5: memref<256x10xf32, #tpu.memory_space<vmem>>) attributes {dimension_semantics = [#tpu.dimension_semantics<parallel>], iteration_bounds = array<i64: 1>, scalar_prefetch = 0 : i64, scratch_operands = 1 : i64, tpu.core_type = #tpu.core_type<tc>, window_params = [{transform_indices = @transform_0, window_bounds = array<i64: 32, 10>}, {pipeline_mode = #tpu.pipeline_mode<synchronous>, transform_indices = @transform_1, window_bounds = array<i64: 64, 131>}, {pipeline_mode = #tpu.pipeline_mode<synchronous>, transform_indices = @transform_2, window_bounds = array<i64: 16, 259>}, {transform_indices = @transform_3, window_bounds = array<i64: 16, 10>}]} {
    %c0 = arith.constant 0 : index
    %c0_0 = arith.constant 0 : index
    %0 = vector.load %arg1[%c0, %c0_0] : memref<32x10xf32, #tpu.memory_space<vmem>>, vector<32x10xf32>
    %1 = math.tanh %0 : vector<32x10xf32>
    %2 = arith.addf %1, %1 : vector<32x10xf32>
    %c0_1 = arith.constant 0 : index
    %c0_2 = arith.constant 0 : index
    %3 = vector.load %arg5[%c0_1, %c0_2] : memref<256x10xf32, #tpu.memory_space<vmem>>, vector<32x10xf32>
    tpu.vector_store %arg5[%c0_1, %c0_2], %2 {strides = array<i32>} : memref<256x10xf32, #tpu.memory_space<vmem>>, vector<32x10xf32>,
    %4 = arith.mulf %2, %2 : vector<32x10xf32>
    %cst = arith.constant 1.000000e+00 : f32
    %5 = vector.broadcast %cst : f32 to vector<32x10xf32>
    %6 = arith.subf %4, %5 : vector<32x10xf32>
    %c32 = arith.constant 32 : index
    %c0_3 = arith.constant 0 : index
    %7 = vector.load %arg5[%c32, %c0_3] : memref<256x10xf32, #tpu.memory_space<vmem>>, vector<32x10xf32>
    tpu.vector_store %arg5[%c32, %c0_3], %6 {strides = array<i32>} : memref<256x10xf32, #tpu.memory_space<vmem>>, vector<32x10xf32>,
    %8 = arith.mulf %2, %6 : vector<32x10xf32>
    %9 = arith.subf %8, %2 : vector<32x10xf32>
    %c64 = arith.constant 64 : index
    %c0_4 = arith.constant 0 : index
    %10 = vector.load %arg5[%c64, %c0_4] : memref<256x10xf32, #tpu.memory_space<vmem>>, vector<32x10xf32>
    tpu.vector_store %arg5[%c64, %c0_4], %9 {strides = array<i32>} : memref<256x10xf32, #tpu.memory_space<vmem>>, vector<32x10xf32>,
    %11 = arith.mulf %2, %9 : vector<32x10xf32>
    %12 = arith.subf %11, %6 : vector<32x10xf32>
    %c96 = arith.constant 96 : index
    %c0_5 = arith.constant 0 : index
    %13 = vector.load %arg5[%c96, %c0_5] : memref<256x10xf32, #tpu.memory_space<vmem>>, vector<32x10xf32>
    tpu.vector_store %arg5[%c96, %c0_5], %12 {strides = array<i32>} : memref<256x10xf32, #tpu.memory_space<vmem>>, vector<32x10xf32>,
    %c0_6 = arith.constant 0 : index
    %c0_7 = arith.constant 0 : index
    %14 = vector.load %arg2[%c0_6, %c0_7] : memref<64x131xf32, #tpu.memory_space<vmem>>, vector<64x128xf32>
    %c0_8 = arith.constant 0 : index
    %c128 = arith.constant 128 : index
    %15 = vector.load %arg2[%c0_8, %c128] : memref<64x131xf32, #tpu.memory_space<vmem>>, vector<64x1xf32>
    %c0_9 = arith.constant 0 : index
    %c129 = arith.constant 129 : index
    %16 = vector.load %arg2[%c0_9, %c129] : memref<64x131xf32, #tpu.memory_space<vmem>>, vector<64x1xf32>
    %c0_10 = arith.constant 0 : index
    %c130 = arith.constant 130 : index
    %17 = vector.load %arg2[%c0_10, %c130] : memref<64x131xf32, #tpu.memory_space<vmem>>, vector<64x1xf32>
    %c0_11 = arith.constant 0 : index
    %c0_12 = arith.constant 0 : index
    %18 = vector.load %arg5[%c0_11, %c0_12] : memref<256x10xf32, #tpu.memory_space<vmem>>, vector<128x10xf32>
    %cst_13 = arith.constant dense<0.000000e+00> : vector<64x10xf32>
    %19 = tpu.matmul %14, %18, %cst_13 {dimension_numbers = #tpu.dot_dimension_numbers<[1], [0], [0], [1], [0, 0, 1, 1], [], []>} : vector<64x128xf32>, vector<128x10xf32>, vector<64x10xf32> -> vector<64x10xf32>
    %20 = vector.broadcast %15 : vector<64x1xf32> to vector<64x10xf32>
    %21 = arith.addf %19, %20 : vector<64x10xf32>
    %cst_14 = arith.constant 1.562500e-02 : f32
    %22 = vector.broadcast %cst_14 : f32 to vector<1x64xf32>
    %cst_15 = arith.constant dense<0.000000e+00> : vector<1x10xf32>
    %23 = tpu.matmul %22, %21, %cst_15 {dimension_numbers = #tpu.dot_dimension_numbers<[1], [0], [0], [1], [0, 0, 1, 1], [], []>} : vector<1x64xf32>, vector<64x10xf32>, vector<1x10xf32> -> vector<1x10xf32>
    %24 = vector.broadcast %23 : vector<1x10xf32> to vector<64x10xf32>
    %25 = arith.subf %21, %24 : vector<64x10xf32>
    %26 = arith.mulf %25, %25 : vector<64x10xf32>
    %cst_16 = arith.constant dense<0.000000e+00> : vector<1x10xf32>
    %27 = tpu.matmul %22, %26, %cst_16 {dimension_numbers = #tpu.dot_dimension_numbers<[1], [0], [0], [1], [0, 0, 1, 1], [], []>} : vector<1x64xf32>, vector<64x10xf32>, vector<1x10xf32> -> vector<1x10xf32>
    %cst_17 = arith.constant 9.99999974E-6 : f32
    %28 = vector.broadcast %cst_17 : f32 to vector<1x10xf32>
    %29 = arith.addf %27, %28 : vector<1x10xf32>
    %30 = math.rsqrt %29 : vector<1x10xf32>
    %31 = vector.broadcast %30 : vector<1x10xf32> to vector<64x10xf32>
    %32 = arith.mulf %25, %31 : vector<64x10xf32>
    %33 = vector.broadcast %16 : vector<64x1xf32> to vector<64x10xf32>
    %34 = arith.mulf %32, %33 : vector<64x10xf32>
    %35 = vector.broadcast %17 : vector<64x1xf32> to vector<64x10xf32>
    %36 = arith.addf %34, %35 : vector<64x10xf32>
    %37 = math.tanh %36 : vector<64x10xf32>
    %38 = arith.addf %37, %37 : vector<64x10xf32>
    %c0_18 = arith.constant 0 : index
    %c0_19 = arith.constant 0 : index
    %39 = vector.load %arg5[%c0_18, %c0_19] : memref<256x10xf32, #tpu.memory_space<vmem>>, vector<64x10xf32>
    tpu.vector_store %arg5[%c0_18, %c0_19], %38 {strides = array<i32>} : memref<256x10xf32, #tpu.memory_space<vmem>>, vector<64x10xf32>,
    %40 = arith.mulf %38, %38 : vector<64x10xf32>
    %cst_20 = arith.constant 1.000000e+00 : f32
    %41 = vector.broadcast %cst_20 : f32 to vector<64x10xf32>
    %42 = arith.subf %40, %41 : vector<64x10xf32>
    %c64_21 = arith.constant 64 : index
    %c0_22 = arith.constant 0 : index
    %43 = vector.load %arg5[%c64_21, %c0_22] : memref<256x10xf32, #tpu.memory_space<vmem>>, vector<64x10xf32>
    tpu.vector_store %arg5[%c64_21, %c0_22], %42 {strides = array<i32>} : memref<256x10xf32, #tpu.memory_space<vmem>>, vector<64x10xf32>,
    %44 = arith.mulf %38, %42 : vector<64x10xf32>
    %45 = arith.subf %44, %38 : vector<64x10xf32>
    %c128_23 = arith.constant 128 : index
    %c0_24 = arith.constant 0 : index
    %46 = vector.load %arg5[%c128_23, %c0_24] : memref<256x10xf32, #tpu.memory_space<vmem>>, vector<64x10xf32>
    tpu.vector_store %arg5[%c128_23, %c0_24], %45 {strides = array<i32>} : memref<256x10xf32, #tpu.memory_space<vmem>>, vector<64x10xf32>,
    %47 = arith.mulf %38, %45 : vector<64x10xf32>
    %48 = arith.subf %47, %42 : vector<64x10xf32>
    %c192 = arith.constant 192 : index
    %c0_25 = arith.constant 0 : index
    %49 = vector.load %arg5[%c192, %c0_25] : memref<256x10xf32, #tpu.memory_space<vmem>>, vector<64x10xf32>
    tpu.vector_store %arg5[%c192, %c0_25], %48 {strides = array<i32>} : memref<256x10xf32, #tpu.memory_space<vmem>>, vector<64x10xf32>,
    %c0_26 = arith.constant 0 : index
    %c0_27 = arith.constant 0 : index
    %50 = vector.load %arg3[%c0_26, %c0_27] : memref<16x259xf32, #tpu.memory_space<vmem>>, vector<16x256xf32>
    %c0_28 = arith.constant 0 : index
    %c256 = arith.constant 256 : index
    %51 = vector.load %arg3[%c0_28, %c256] : memref<16x259xf32, #tpu.memory_space<vmem>>, vector<16x1xf32>
    %c0_29 = arith.constant 0 : index
    %c257 = arith.constant 257 : index
    %52 = vector.load %arg3[%c0_29, %c257] : memref<16x259xf32, #tpu.memory_space<vmem>>, vector<16x1xf32>
    %c0_30 = arith.constant 0 : index
    %c258 = arith.constant 258 : index
    %53 = vector.load %arg3[%c0_30, %c258] : memref<16x259xf32, #tpu.memory_space<vmem>>, vector<16x1xf32>
    %c0_31 = arith.constant 0 : index
    %c0_32 = arith.constant 0 : index
    %54 = vector.load %arg5[%c0_31, %c0_32] : memref<256x10xf32, #tpu.memory_space<vmem>>, vector<256x10xf32>
    %cst_33 = arith.constant dense<0.000000e+00> : vector<16x10xf32>
    %55 = tpu.matmul %50, %54, %cst_33 {dimension_numbers = #tpu.dot_dimension_numbers<[1], [0], [0], [1], [0, 0, 1, 1], [], []>} : vector<16x256xf32>, vector<256x10xf32>, vector<16x10xf32> -> vector<16x10xf32>
    %56 = vector.broadcast %51 : vector<16x1xf32> to vector<16x10xf32>
    %57 = arith.addf %55, %56 : vector<16x10xf32>
    %cst_34 = arith.constant 6.250000e-02 : f32
    %58 = vector.broadcast %cst_34 : f32 to vector<1x16xf32>
    %cst_35 = arith.constant dense<0.000000e+00> : vector<1x10xf32>
    %59 = tpu.matmul %58, %57, %cst_35 {dimension_numbers = #tpu.dot_dimension_numbers<[1], [0], [0], [1], [0, 0, 1, 1], [], []>} : vector<1x16xf32>, vector<16x10xf32>, vector<1x10xf32> -> vector<1x10xf32>
    %60 = vector.broadcast %59 : vector<1x10xf32> to vector<16x10xf32>
    %61 = arith.subf %57, %60 : vector<16x10xf32>
    %62 = arith.mulf %61, %61 : vector<16x10xf32>
    %cst_36 = arith.constant dense<0.000000e+00> : vector<1x10xf32>
    %63 = tpu.matmul %58, %62, %cst_36 {dimension_numbers = #tpu.dot_dimension_numbers<[1], [0], [0], [1], [0, 0, 1, 1], [], []>} : vector<1x16xf32>, vector<16x10xf32>, vector<1x10xf32> -> vector<1x10xf32>
    %cst_37 = arith.constant 9.99999974E-6 : f32
    %64 = vector.broadcast %cst_37 : f32 to vector<1x10xf32>
    %65 = arith.addf %63, %64 : vector<1x10xf32>
    %66 = math.rsqrt %65 : vector<1x10xf32>
    %67 = vector.broadcast %66 : vector<1x10xf32> to vector<16x10xf32>
    %68 = arith.mulf %61, %67 : vector<16x10xf32>
    %69 = vector.broadcast %52 : vector<16x1xf32> to vector<16x10xf32>
    %70 = arith.mulf %68, %69 : vector<16x10xf32>
    %71 = vector.broadcast %53 : vector<16x1xf32> to vector<16x10xf32>
    %72 = arith.addf %70, %71 : vector<16x10xf32>
    %c0_38 = arith.constant 0 : index
    %c0_39 = arith.constant 0 : index
    %73 = vector.load %arg4[%c0_38, %c0_39] : memref<16x10xf32, #tpu.memory_space<vmem>>, vector<16x10xf32>
    tpu.vector_store %arg4[%c0_38, %c0_39], %72 {strides = array<i32>} : memref<16x10xf32, #tpu.memory_space<vmem>>, vector<16x10xf32>,
    return
  }
  func.func @transform_0(%arg0: i32) -> (i32, i32) {
    %c0_i32 = arith.constant 0 : i32
    %c0_i32_0 = arith.constant 0 : i32
    return %c0_i32, %arg0 : i32, i32
  }
  func.func @transform_1(%arg0: i32) -> (i32, i32) {
    %c0_i32 = arith.constant 0 : i32
    %c0_i32_0 = arith.constant 0 : i32
    %c0_i32_1 = arith.constant 0 : i32
    return %c0_i32, %c0_i32_0 : i32, i32
  }
  func.func @transform_2(%arg0: i32) -> (i32, i32) {
    %c0_i32 = arith.constant 0 : i32
    %c0_i32_0 = arith.constant 0 : i32
    %c0_i32_1 = arith.constant 0 : i32
    return %c0_i32, %c0_i32_0 : i32, i32
  }
  func.func @transform_3(%arg0: i32) -> (i32, i32) {
    %c0_i32 = arith.constant 0 : i32
    %c0_i32_0 = arith.constant 0 : i32
    return %c0_i32, %arg0 : i32, i32
  }
}

</mosaic_0001>

<bundles_post_ra>
// kernel: tpu_custom_call.1
= control target key start
LH: loop header
LB: loop body
LE: loop exit
PB: predicated region body
PF: predicated region fallthrough
CT: control target
= control target key end

     0   :  { %8 = vsyncpa [#allocation4], 0  ;;  %s1601_s0 = inlined_call_operand.vmem [shape: f32[32,10], index: 0, kind: input, shape index: {}]   ;;  %s1602_s1 = inlined_call_operand.hbm [shape: f32[64,131], index: 1, kind: input, shape index: {}]   ;;  %s1603_s2 = inlined_call_operand.vmem [shape: f32[16,259], index: 2, kind: input, shape index: {}]   ;;  %s1604_s3 = inlined_call_operand.hbm [shape: f32[16,10], index: 3, kind: output, shape index: {}]  }
   0x1   :  { %9 = vsyncpa [#allocation5], 0  ;;  %s1333_s12 = smov [#allocation3]   ;;  %s1285_s16 = scalar_lea.hbm %s1602_s1, 2048 }
   0x2   :  { %s17_s13 = sshll.u32 %s1333_s12, 4  ;;  %p1286_p0 = scmp.ne.s32.totalorder %s1602_s1, %s1285_s16  ;;  %s18_s13 = int_to_ptr.vmem [resolvable:$true] %s17_s13 }
   0x3   :  { %p1289_p1 = scmp.lt.u32.totalorder %s1285_s16, %s1602_s1 }
   0x5   :  { %p1291_p2 = pnand %p1289_p1, %p1286_p0 }
   0x7   :  { %1294 = shalt.err (!%p1291_p2)
}
   0x8   :  { %s1295_s21 = scalar_lea.vmem %s18_s13, 2048  ;;  %p1300_p4 = scmp.lt.s32.totalorder %s18_s13, %s18_s13 }
   0x9   :  { %p1296_p3 = scmp.ne.s32.totalorder %s18_s13, %s1295_s21  ;;  %p1301_p5 = scmp.lt.s32.totalorder %s1295_s21, %s1295_s21 }
   0xb   :  { %p1302_p6 = por %p1301_p5, %p1300_p4 }
   0xd   :  { %p1303_p7 = pnand %p1302_p6, %p1296_p3 }
   0xf   :  { %1306 = shalt.err (!%p1303_p7)
}
  0x10   :  { %s1334_s22 = smov 256   ;;  %s1335_s23 = smov 16  }
  0x11   :  { %23 = dma.hbm_to_vmem [thread:$0]  %s1602_s1, 2048, %s18_s13, [#allocation4], %s1334_s22, %s1334_s22, %s1335_s23  }
  0x12   :  { %1329 = dma.done.wait [#allocation4], 2048  }
  0x13   :  { %1330 = vsyncadd [#allocation4], 4294965248  ;;  %v1336_v0 = vmov 0   ;;  %v29_v1 = vld [vmem:[%s1601_s0] sm:$0xff]  ;;  %v30_v2 = vld [vmem:[%s1601_s0 + $0x8] sm:$0xff]  ;;  %vm41_vm0 = vcmask 80896  }
  0x14   :  { %1239 = vset.pattern.permute.xlu0 %v1336_v0  ;;  %1240 = vset.pattern.permute.xlu1 %v1336_v0  ;;  %v31_v3 = vld [vmem:[%s1601_s0 + $0x10] sm:$0xff]  ;;  %1257 = vtanh.f32 %v29_v1  ;;  %v32_v4 = vld [vmem:[%s1601_s0 + $0x18] sm:$0xff]  ;;  %v1399_v8 = vld [vmem:[#allocation3 + $0x18] sm:$0xff]  ;;  %vm1338_vm1 = vmmov 0   ;;  %vm259_vm2 = vcmask 523264   ;;  %vm735_vm3 = vcmask 130048  }
  0x15   :  { %v82_v5 = vld [vmem:[#allocation3] sm:$0xff]  ;;  %1259 = vtanh.f32 %v30_v2  ;;  %v1393_v6 = vld [vmem:[#allocation3 + $0x8] sm:$0xff]  ;;  %v1401_v9 = vld [vmem:[#allocation3 + $0x38] sm:$0xff] }
  0x16   :  { %1067 = vmatprep.mubr.f32.mxu0 %v82_v5  ;;  %1261 = vtanh.f32 %v31_v3  ;;  %v1395_v7 = vld [vmem:[#allocation3 + $0x28] sm:$0xff]  ;;  %116 = vperm.xlu0 %1239, %v1393_v6   ;;  %v1407_v11 = vld [vmem:[#allocation3 + $0x58] sm:$0xff] }
  0x17   :  { %1263 = vtanh.f32 %v32_v4  ;;  %126 = vperm.xlu1 %1240, %v1395_v7   ;;  %v1405_v10 = vld [vmem:[#allocation3 + $0x48] sm:$0xff]  ;;  %v1414_v21 = vld [vmem:[#allocation3 + $0x78] sm:$0xff] }
  0x18   :  { %v1412_v20 = vld [vmem:[#allocation3 + $0x68] sm:$0xff] }
  0x1a   :  { %121 = vperm.xlu0 %1239, %v1399_v8  }
  0x1b   :  { %131 = vperm.xlu1 %1240, %v1401_v9  }
  0x1e   :  { %v1258_v12 = vpop.eup %1257  ;;  %136 = vperm.xlu0 %1239, %v1405_v10  }
  0x1f   :  { %v1260_v13 = vpop.eup %1259  ;;  %v37_v14 = vadd.f32 %v1258_v12, %v1258_v12  ;;  %141 = vperm.xlu1 %1240, %v1407_v11  }
  0x20   :  { %v1262_v15 = vpop.eup %1261  ;;  %v38_v16 = vadd.f32 %v1260_v13, %v1260_v13  ;;  %v83_v13 = vld [vmem:[#allocation3 + $0x10] sm:$0xff] }
  0x21   :  { %v1264_v17 = vpop.eup %1263  ;;  %42 = vst.msk [vmem:[#allocation2] sm:$0xff] %vm41_vm0, %v37_v14  ;;  %v39_v18 = vadd.f32 %v1262_v15, %v1262_v15  ;;  %v46_v19 = vmul.f32 %v37_v14, %v37_v14  ;;  %v85_v15 = vld [vmem:[#allocation3 + $0x30] sm:$0xff] }
  0x22   :  { %43 = vst.msk [vmem:[#allocation2 + $0x8] sm:$0xff] %vm41_vm0, %v38_v16  ;;  %v40_v22 = vadd.f32 %v1264_v17, %v1264_v17  ;;  %v47_v23 = vmul.f32 %v38_v16, %v38_v16  ;;  %146 = vperm.xlu0 %1239, %v1412_v20   ;;  %v87_v17 = vld [vmem:[#allocation3 + $0x50] sm:$0xff] }
  0x23   :  { %44 = vst.msk [vmem:[#allocation2 + $0x10] sm:$0xff] %vm41_vm0, %v39_v18  ;;  %v933_v24 = vadd.f32 -1.0, %v46_v19  ;;  %v48_v25 = vmul.f32 %v39_v18, %v39_v18  ;;  %151 = vperm.xlu1 %1240, %v1414_v21   ;;  %v89_v19 = vld [vmem:[#allocation3 + $0x70] sm:$0xff] }
  0x24   :  { %45 = vst.msk [vmem:[#allocation2 + $0x18] sm:$0xff] %vm41_vm0, %v40_v22  ;;  %v934_v26 = vadd.f32 -1.0, %v47_v23  ;;  %v49_v27 = vmul.f32 %v40_v22, %v40_v22  ;;  %v1339_v23 = vmov 0.0  }
  0x25   :  { %54 = vst.msk [vmem:[#allocation2 + $0x20] sm:$0xff] %vm41_vm0, %v933_v24  ;;  %v935_v28 = vadd.f32 -1.0, %v48_v25  ;;  %v58_v29 = vmul.f32 %v933_v24, %v37_v14  ;;  %1095 = vmatprep.mubr.msk.f32.mxu1 %vm1338_vm1, %v1339_v23 }
  0x26   :  { %55 = vst.msk [vmem:[#allocation2 + $0x28] sm:$0xff] %vm41_vm0, %v934_v26  ;;  %v936_v30 = vadd.f32 -1.0, %v49_v27  ;;  %v59_v31 = vmul.f32 %v934_v26, %v38_v16 }
  0x27   :  { %56 = vst.msk [vmem:[#allocation2 + $0x30] sm:$0xff] %vm41_vm0, %v935_v28  ;;  %v62_v32 = vsub.f32 %v58_v29, %v37_v14  ;;  %v60_v33 = vmul.f32 %v935_v28, %v39_v18 }
  0x28   :  { %v98_v34 = vld [vmem:[#allocation2] sm:$0xff]  ;;  %57 = vst.msk [vmem:[#allocation2 + $0x38] sm:$0xff] %vm41_vm0, %v936_v30  ;;  %v63_v35 = vsub.f32 %v59_v31, %v38_v16  ;;  %v61_v36 = vmul.f32 %v936_v30, %v40_v22 }
  0x29   :  { %v99_v37 = vld [vmem:[#allocation2 + $0x8] sm:$0xff]  ;;  %66 = vst.msk [vmem:[#allocation2 + $0x40] sm:$0xff] %vm41_vm0, %v62_v32  ;;  %v64_v38 = vsub.f32 %v60_v33, %v39_v18  ;;  %v70_v39 = vmul.f32 %v62_v32, %v37_v14  ;;  %v84_v14 = vld [vmem:[#allocation3 + $0x20] sm:$0xff] }
  0x2a   :  { %v1131_v40 = vpack.c.bf16 %v99_v37, %v98_v34  ;;  %v100_v41 = vld [vmem:[#allocation2 + $0x10] sm:$0xff]  ;;  %67 = vst.msk [vmem:[#allocation2 + $0x48] sm:$0xff] %vm41_vm0, %v63_v35  ;;  %v65_v42 = vsub.f32 %v61_v36, %v40_v22  ;;  %v71_v43 = vmul.f32 %v63_v35, %v38_v16  ;;  %v86_v16 = vld [vmem:[#allocation3 + $0x40] sm:$0xff] }
  0x2b   :  { %v101_v44 = vld [vmem:[#allocation2 + $0x18] sm:$0xff]  ;;  %68 = vst.msk [vmem:[#allocation2 + $0x50] sm:$0xff] %vm41_vm0, %v64_v38  ;;  %v74_v45 = vsub.f32 %v70_v39, %v933_v24  ;;  %v72_v46 = vmul.f32 %v64_v38, %v39_v18  ;;  %v88_v18 = vld [vmem:[#allocation3 + $0x60] sm:$0xff] }
  0x2c   :  { %1132 = vmatprep.subr.bf16.mxu0 %v1131_v40  ;;  %v1135_v47 = vpack.c.bf16 %v101_v44, %v100_v41  ;;  %v102_v48 = vld [vmem:[#allocation2 + $0x20] sm:$0xff]  ;;  %69 = vst.msk [vmem:[#allocation2 + $0x58] sm:$0xff] %vm41_vm0, %v65_v42  ;;  %v75_v49 = vsub.f32 %v71_v43, %v934_v26  ;;  %v73_v50 = vmul.f32 %v65_v42, %v40_v22  ;;  %v1337_v22 = vmov 0.0|0.0  }
  0x2d   :  { %1134 = vmatpush3.bf16.msra.mxu0 %v1131_v40  ;;  %v103_v51 = vld [vmem:[#allocation2 + $0x28] sm:$0xff]  ;;  %78 = vst.msk [vmem:[#allocation2 + $0x60] sm:$0xff] %vm41_vm0, %v74_v45  ;;  %v76_v52 = vsub.f32 %v72_v46, %v935_v28  ;;  %1163 = vmatprep.subr.bf16.mxu1 %v1337_v22 }
  0x2e   :  { %1136 = vmatprep.subr.bf16.mxu0 %v1135_v47  ;;  %v1139_v53 = vpack.c.bf16 %v103_v51, %v102_v48  ;;  %79 = vst.msk [vmem:[#allocation2 + $0x68] sm:$0xff] %vm41_vm0, %v75_v49  ;;  %v77_v54 = vsub.f32 %v73_v50, %v936_v30  ;;  %v104_v55 = vld [vmem:[#allocation2 + $0x30] sm:$0xff] }
  0x2f   :  { %v105_v56 = vld [vmem:[#allocation2 + $0x38] sm:$0xff]  ;;  %80 = vst.msk [vmem:[#allocation2 + $0x70] sm:$0xff] %vm41_vm0, %v76_v52  ;;  %v1340_v52 = vmov 0.015625  }
  0x30   :  { %81 = vst.msk [vmem:[#allocation2 + $0x78] sm:$0xff] %vm41_vm0, %v77_v54  ;;  %v1143_v57 = vpack.c.bf16 %v105_v56, %v104_v55  ;;  %v106_v58 = vld [vmem:[#allocation2 + $0x40] sm:$0xff]  ;;  %v1342_v54 = vmov 2  }
  0x31   :  { %1138 = vmatpush3.bf16.msra.mxu0 %v1135_v47  ;;  %v107_v59 = vld [vmem:[#allocation2 + $0x48] sm:$0xff] }
  0x32   :  { %1140 = vmatprep.subr.bf16.mxu0 %v1139_v53  ;;  %v1147_v60 = vpack.c.bf16 %v107_v59, %v106_v58  ;;  %v108_v61 = vld [vmem:[#allocation2 + $0x50] sm:$0xff] }
  0x33   :  { %v109_v62 = vld [vmem:[#allocation2 + $0x58] sm:$0xff] }
  0x34   :  { %v1151_v63 = vpack.c.bf16 %v109_v62, %v108_v61  ;;  %v110_v1 = vld [vmem:[#allocation2 + $0x60] sm:$0xff] }
  0x35   :  { %1142 = vmatpush3.bf16.msra.mxu0 %v1139_v53  ;;  %v111_v2 = vld [vmem:[#allocation2 + $0x68] sm:$0xff]  ;;  %v1341_v53 = vmov 1  }
  0x36   :  { %1144 = vmatprep.subr.bf16.mxu0 %v1143_v57  ;;  %v1155_v3 = vpack.c.bf16 %v111_v2, %v110_v1  ;;  %v112_v4 = vld [vmem:[#allocation2 + $0x70] sm:$0xff]  ;;  %1242 = vset.pattern.permute.xlu1 %v1341_v53 }
  0x37   :  { %v113_v5 = vld [vmem:[#allocation2 + $0x78] sm:$0xff]  ;;  %1241 = vset.pattern.permute.xlu0 %v1341_v53  ;;  %441 = vperm.xlu1 %1242, %v1399_v8  }
  0x38   :  { %v1159_v12 = vpack.c.bf16 %v113_v5, %v112_v4  ;;  %437 = vperm.xlu0 %1241, %v1393_v6  }
  0x39   :  { %1146 = vmatpush3.bf16.msra.mxu0 %v1143_v57 }
  0x3a   :  { %1148 = vmatprep.subr.bf16.mxu0 %v1147_v60 }
  0x3b   :  { %1243 = vset.pattern.permute.xlu1 %v1342_v54 }
  0x3c   :  { %453 = vperm.xlu0 %1241, %v1405_v10   ;;  %477 = vperm.xlu1 %1243, %v1393_v6   ;;  %v333_v6 = vlaneseq }
  0x3d   :  { %1150 = vmatpush3.bf16.msra.mxu0 %v1147_v60 }
  0x3e   :  { %1152 = vmatprep.subr.bf16.mxu0 %v1151_v63 }
  0x40   :  { %1246 = vset.pattern.permute.xlu0 %v1342_v54  ;;  %1244 = vset.pattern.permute.xlu1 %v1341_v53 }
  0x41   :  { %1154 = vmatpush3.bf16.msra.mxu0 %v1151_v63  ;;  %481 = vperm.xlu0 %1246, %v1399_v8  }
  0x42   :  { %1156 = vmatprep.subr.bf16.mxu0 %v1155_v3  ;;  %445 = vperm.xlu1 %1244, %v1395_v7  }
  0x45   :  { %1158 = vmatpush3.bf16.msra.mxu0 %v1155_v3  ;;  %485 = vperm.xlu0 %1246, %v1395_v7   ;;  %v334_v7 = vshrl.u32 %v333_v6, 7 }
  0x46   :  { %1160 = vmatprep.subr.bf16.mxu0 %v1159_v12  ;;  %449 = vperm.xlu1 %1244, %v1401_v9  }
  0x47   :  { %v1490_v8 = vsub.s32 0, %v334_v7 }
  0x49   :  { %1162 = vmatpush3.bf16.msra.mxu0 %v1159_v12  ;;  %497 = vperm.xlu0 %1246, %v1407_v11  }
  0x4a   :  { %1245 = vset.pattern.permute.xlu1 %v1342_v54 }
  0x4b   :  { %489 = vperm.xlu1 %1245, %v1401_v9  }
  0x4c   :  { %1068 = vmatmul.mubr.f32.vlgmr.msra.gmra.mrb[0].mxu0 %v83_v13 }
  0x4d   :  { %1070 = vmatprep.mubr.f32.mxu0 %v84_v14  ;;  %501 = vperm.xlu0 %1246, %v1412_v20  }
  0x4f   :  { %1247 = vset.pattern.permute.xlu1 %v1341_v53 }
  0x50   :  { %1071 = vmatmul.mubr.f32.gmra.mrb[2].mxu0 %v85_v15  ;;  %457 = vperm.xlu1 %1247, %v1407_v11   ;;  %v613_v15 = vld [vmem:[%s1603_s2 + $0x8] sm:$0xff] }
  0x51   :  { %1073 = vmatprep.mubr.f32.mxu0 %v86_v16  ;;  %1251 = vset.pattern.permute.xlu0 %v1336_v0  ;;  %v616_v16 = vld [vmem:[%s1603_s2 + $0x10] sm:$0xff] }
  0x52   :  { %652 = vperm.xlu0 %1251, %v616_v16  }
  0x54   :  { %1074 = vmatmul.mubr.f32.gmra.mrb[4].mxu0 %v87_v17  ;;  %1248 = vset.pattern.permute.xlu1 %v1342_v54  ;;  %v617_v17 = vld [vmem:[%s1603_s2 + $0x28] sm:$0xff] }
  0x55   :  { %1076 = vmatprep.mubr.f32.mxu0 %v88_v18  ;;  %493 = vperm.xlu1 %1248, %v1405_v10  }
  0x56   :  { %1254 = vset.pattern.permute.xlu0 %v1341_v53 }
  0x57   :  { %899 = vperm.xlu0 %1254, %v617_v17  }
  0x58   :  { %1077 = vmatmul.mubr.f32.gmra.mrb[6].mxu0 %v89_v19 }
  0x59   :  { %1249 = vset.pattern.permute.xlu1 %v1341_v53  ;;  %724 = vmatprep.mubr.f32.mxu0 %v613_v15 }
  0x5a   :  { %461 = vperm.xlu1 %1249, %v1412_v20  }
  0x5b   :  { %1256 = vset.pattern.permute.xlu0 %v1342_v54 }
  0x5e   :  { %465 = vperm.xlu1 %1249, %v1414_v21  }
  0x62   :  { %1250 = vset.pattern.permute.xlu1 %v1342_v54 }
  0x63   :  { %505 = vperm.xlu1 %1250, %v1414_v21  }
  0x67   :  { %1252 = vset.pattern.permute.xlu1 %v1336_v0 }
  0x68   :  { %657 = vperm.xlu1 %1252, %v617_v17  }
  0x6c   :  { %1253 = vset.pattern.permute.xlu1 %v1341_v53 }
  0x6d   :  { %895 = vperm.xlu1 %1253, %v616_v16  }
  0x71   :  { %1255 = vset.pattern.permute.xlu1 %v1342_v54 }
  0x72   :  { %905 = vperm.xlu1 %1255, %v616_v16  }
  0x76   :  { %909 = vperm.xlu1 %1255, %v617_v17  }
  0x95   :  { %v117_v24 = vpop.permute.xlu0 %116 }
  0x96   :  { %v127_v25 = vpop.permute.xlu1 %126 }
  0x99   :  { %v122_v26 = vpop.permute.xlu0 %121 }
  0x9a   :  { %v132_v27 = vpop.permute.xlu1 %131 }
  0x9d   :  { %v137_v38 = vpop.permute.xlu0 %136 }
  0x9e   :  { %v142_v36 = vpop.permute.xlu1 %141 }
  0xa1   :  { %v147_v47 = vpop.permute.xlu0 %146 }
  0xa2   :  { %v152_v44 = vpop.permute.xlu1 %151 }
  0xb6   :  { %v442_v18 = vpop.permute.xlu1 %441 }
  0xbb   :  { %v478_v19 = vpop.permute.xlu1 %477 }
 0x11f   :  { %v1069_v28 = vpop.f32.mrb[0].mxu0 }
 0x120   :  { %v1436_v29 = vadd.f32 %v1069_v28, %v122_v26  ;;  %v220_v30 = vpop.f32.mrb[1].mxu0 }
 0x121   :  { %v1438_v31 = vadd.f32 %v220_v30, %v117_v24  ;;  %v446_v24 = vpop.permute.xlu1 %445 }
 0x123   :  { %v1072_v32 = vpop.f32.mrb[2].mxu0  ;;  %v1164_v33 = vpack.c.bf16 %v1436_v29, %v1438_v31 }
 0x124   :  { %v1442_v34 = vadd.f32 %v1072_v32, %v132_v27  ;;  %v230_v35 = vpop.f32.mrb[3].mxu0  ;;  %v438_v27 = vpop.permute.xlu0 %437 }
 0x125   :  { %v1444_v37 = vadd.f32 %v230_v35, %v127_v25  ;;  %1165 = vmatpush3.bf16.msra.mxu1 %v1164_v33  ;;  %v450_v25 = vpop.permute.xlu1 %449 }
 0x126   :  { %1166 = vmatprep.subr.bf16.mxu1 %v1337_v22 }
 0x127   :  { %v1167_v39 = vpack.c.bf16 %v1442_v34, %v1444_v37  ;;  %v1075_v40 = vpop.f32.mrb[4].mxu0 }
 0x128   :  { %v1449_v41 = vadd.f32 %v1075_v40, %v142_v36  ;;  %v240_v42 = vpop.f32.mrb[5].mxu0 }
 0x129   :  { %v241_v43 = vadd.f32 %v240_v42, %v137_v38  ;;  %1168 = vmatpush3.bf16.msra.mxu1 %v1167_v39  ;;  %v490_v26 = vpop.permute.xlu1 %489 }
 0x12a   :  { %1169 = vmatprep.subr.bf16.mxu1 %v1337_v22 }
 0x12b   :  { %v1170_v45 = vpack.c.bf16 %v1449_v41, %v241_v43  ;;  %v1078_v46 = vpop.f32.mrb[6].mxu0 }
 0x12c   :  { %v1453_v48 = vadd.f32 %v1078_v46, %v152_v44  ;;  %v250_v49 = vpop.f32.mrb[7].mxu0 }
 0x12d   :  { %v251_v50 = vadd.f32 %v250_v49, %v147_v47  ;;  %1171 = vmatpush3.bf16.msra.mxu1 %v1170_v45  ;;  %v458_v28 = vpop.permute.xlu1 %457 }
 0x12e   :  { %1172 = vmatprep.subr.bf16.mxu1 %v1337_v22 }
 0x12f   :  { %v1173_v51 = vpack.c.bf16 %v1453_v48, %v251_v50 }
 0x131   :  { %1174 = vmatpush3.bf16.msra.mxu1 %v1173_v51  ;;  %v494_v33 = vpop.permute.xlu1 %493 }
 0x132   :  { %1175 = vmatprep.subr.bf16.mxu1 %v1337_v22 }
 0x134   :  { %1096 = vmatmul.mubr.msk.f32.vlgmr.msra.gmra.mrb[0].mxu1 %vm259_vm2, %v1340_v52 }
 0x135   :  { %1114 = vmatprep.mubr.msk.f32.mxu1 %vm1338_vm1, %v1339_v23  ;;  %v462_v35 = vpop.permute.xlu1 %461 }
 0x139   :  { %v466_v39 = vpop.permute.xlu1 %465 }
 0x207   :  { %v329_v9 = vpop.f32.mrb[0].mxu1 }
 0x208   :  { %v336_v11 = vrot.slane %v329_v9, %v1490_v8  ;;  %v1097_v10 = vpop.f32.mrb[1].mxu1 }
 0x20a   :  { %v1494_v55 = vsub.f32 %v1438_v31, %v336_v11  ;;  %v1497_v20 = vsub.f32 %v1436_v29, %v336_v11  ;;  %v1500_v56 = vsub.f32 %v1444_v37, %v336_v11  ;;  %v340_v21 = vsub.f32 %v1442_v34, %v336_v11  ;;  %v454_v29 = vpop.permute.xlu0 %453 }
 0x20b   :  { %v341_v58 = vsub.f32 %v241_v43, %v336_v11  ;;  %v342_v62 = vsub.f32 %v1449_v41, %v336_v11  ;;  %v343_v63 = vsub.f32 %v251_v50, %v336_v11  ;;  %v344_v4 = vsub.f32 %v1453_v48, %v336_v11 }
 0x20c   :  { %v345_v0 = vmul.f32 %v1494_v55, %v1494_v55  ;;  %v346_v57 = vmul.f32 %v1497_v20, %v1497_v20  ;;  %v347_v60 = vmul.f32 %v1500_v56, %v1500_v56  ;;  %v348_v61 = vmul.f32 %v340_v21, %v340_v21 }
 0x20d   :  { %v349_v2 = vmul.f32 %v341_v58, %v341_v58  ;;  %v350_v3 = vmul.f32 %v342_v62, %v342_v62  ;;  %v351_v12 = vmul.f32 %v343_v63, %v343_v63  ;;  %v352_v13 = vmul.f32 %v344_v4, %v344_v4 }
 0x20e   :  { %v1176_v59 = vpack.c.bf16 %v346_v57, %v345_v0  ;;  %v1179_v1 = vpack.c.bf16 %v348_v61, %v347_v60  ;;  %v482_v34 = vpop.permute.xlu0 %481 }
 0x20f   :  { %v1182_v5 = vpack.c.bf16 %v350_v3, %v349_v2  ;;  %v1185_v14 = vpack.c.bf16 %v352_v13, %v351_v12 }
 0x210   :  { %1177 = vmatpush3.bf16.msra.mxu1 %v1176_v59 }
 0x211   :  { %1178 = vmatprep.subr.bf16.mxu1 %v1337_v22 }
 0x212   :  { %v486_v36 = vpop.permute.xlu0 %485 }
 0x214   :  { %1180 = vmatpush3.bf16.msra.mxu1 %v1179_v1 }
 0x215   :  { %1181 = vmatprep.subr.bf16.mxu1 %v1337_v22 }
 0x216   :  { %v498_v44 = vpop.permute.xlu0 %497 }
 0x218   :  { %1183 = vmatpush3.bf16.msra.mxu1 %v1182_v5 }
 0x219   :  { %1184 = vmatprep.subr.bf16.mxu1 %v1337_v22 }
 0x21c   :  { %1186 = vmatpush3.bf16.msra.mxu1 %v1185_v14 }
 0x21d   :  { %1219 = vmatprep.subr.bf16.mxu1 %v1337_v22 }
 0x21f   :  { %1115 = vmatmul.mubr.msk.f32.vlgmr.msra.gmra.mrb[2].mxu1 %vm259_vm2, %v1340_v52 }
 0x220   :  { %1121 = vmatprep.mubr.msk.f32.mxu1 %vm1338_vm1, %v1339_v23 }
 0x2f2   :  { %v419_v30 = vpop.f32.mrb[2].mxu1 }
 0x2f3   :  { %v420_v31 = vadd.f32 1e-05, %v419_v30  ;;  %v1116_v32 = vpop.f32.mrb[3].mxu1 }
 0x2f5   :  { %1265 = vrsqrt.f32 %v420_v31 }
 0x2ff   :  { %v1266_v37 = vpop.eup %1265 }
 0x300   :  { %v427_v38 = vrot.slane %v1266_v37, %v1490_v8 }
 0x302   :  { %v428_v40 = vmul.f32 %v427_v38, %v1494_v55  ;;  %v431_v41 = vmul.f32 %v427_v38, %v340_v21  ;;  %v433_v42 = vmul.f32 %v427_v38, %v342_v62  ;;  %v432_v43 = vmul.f32 %v427_v38, %v341_v58  ;;  %v506_v21 = vpop.permute.xlu1 %505 }
 0x303   :  { %v429_v45 = vmul.f32 %v427_v38, %v1497_v20  ;;  %v434_v46 = vmul.f32 %v427_v38, %v343_v63  ;;  %v430_v47 = vmul.f32 %v427_v38, %v1500_v56  ;;  %v435_v48 = vmul.f32 %v427_v38, %v344_v4  ;;  %v502_v20 = vpop.permute.xlu0 %501 }
 0x304   :  { %v468_v49 = vmul.f32 %v438_v27, %v428_v40  ;;  %v471_v50 = vmul.f32 %v450_v25, %v431_v41  ;;  %v472_v51 = vmul.f32 %v454_v29, %v432_v43  ;;  %v473_v52 = vmul.f32 %v458_v28, %v433_v42 }
 0x305   :  { %v469_v53 = vmul.f32 %v442_v18, %v429_v45  ;;  %v470_v54 = vmul.f32 %v446_v24, %v430_v47  ;;  %v475_v11 = vmul.f32 %v466_v39, %v435_v48  ;;  %v474_v55 = vmul.f32 %v462_v35, %v434_v46 }
 0x306   :  { %v508_v6 = vadd.f32 %v478_v19, %v468_v49  ;;  %v511_v7 = vadd.f32 %v490_v26, %v471_v50  ;;  %v512_v9 = vadd.f32 %v494_v33, %v472_v51  ;;  %v513_v57 = vadd.f32 %v498_v44, %v473_v52 }
 0x307   :  { %v509_v10 = vadd.f32 %v482_v34, %v469_v53  ;;  %v510_v0 = vadd.f32 %v486_v36, %v470_v54  ;;  %v515_v56 = vadd.f32 %v506_v21, %v475_v11  ;;  %v514_v58 = vadd.f32 %v502_v20, %v474_v55 }
 0x308   :  { %1267 = vtanh.f32 %v508_v6 }
 0x309   :  { %1269 = vtanh.f32 %v511_v7 }
 0x30a   :  { %1271 = vtanh.f32 %v512_v9 }
 0x30b   :  { %1273 = vtanh.f32 %v509_v10 }
 0x30c   :  { %1275 = vtanh.f32 %v510_v0 }
 0x30d   :  { %1277 = vtanh.f32 %v513_v57 }
 0x30e   :  { %1279 = vtanh.f32 %v515_v56 }
 0x30f   :  { %1281 = vtanh.f32 %v514_v58 }
 0x312   :  { %v1268_v59 = vpop.eup %1267 }
 0x313   :  { %v1270_v60 = vpop.eup %1269  ;;  %v524_v61 = vadd.f32 %v1268_v59, %v1268_v59 }
 0x314   :  { %v1272_v62 = vpop.eup %1271  ;;  %v527_v63 = vadd.f32 %v1270_v60, %v1270_v60 }
 0x315   :  { %v1274_v1 = vpop.eup %1273  ;;  %532 = vst.msk [vmem:[#allocation2] sm:$0xff] %vm41_vm0, %v524_v61  ;;  %v528_v2 = vadd.f32 %v1272_v62, %v1272_v62  ;;  %v540_v3 = vmul.f32 %v524_v61, %v524_v61 }
 0x316   :  { %v1276_v4 = vpop.eup %1275  ;;  %535 = vst.msk [vmem:[#allocation2 + $0x18] sm:$0xff] %vm41_vm0, %v527_v63  ;;  %v525_v5 = vadd.f32 %v1274_v1, %v1274_v1  ;;  %v543_v12 = vmul.f32 %v527_v63, %v527_v63 }
 0x317   :  { %v1278_v13 = vpop.eup %1277  ;;  %536 = vst.msk [vmem:[#allocation2 + $0x20] sm:$0xff] %vm41_vm0, %v528_v2  ;;  %v544_v14 = vmul.f32 %v528_v2, %v528_v2  ;;  %v526_v15 = vadd.f32 %v1276_v4, %v1276_v4  ;;  %v939_v16 = vadd.f32 -1.0, %v540_v3 }
 0x318   :  { %v1280_v17 = vpop.eup %1279  ;;  %533 = vst.msk [vmem:[#allocation2 + $0x8] sm:$0xff] %vm41_vm0, %v525_v5  ;;  %v541_v18 = vmul.f32 %v525_v5, %v525_v5  ;;  %v529_v19 = vadd.f32 %v1278_v13, %v1278_v13  ;;  %v1540_v24 = vadd.f32 -1.0, %v543_v12 }
 0x319   :  { %v1282_v25 = vpop.eup %1281  ;;  %v943_v26 = vadd.f32 -1.0, %v544_v14  ;;  %534 = vst.msk [vmem:[#allocation2 + $0x10] sm:$0xff] %vm41_vm0, %v526_v15  ;;  %v542_v27 = vmul.f32 %v526_v15, %v526_v15  ;;  %v531_v28 = vadd.f32 %v1280_v17, %v1280_v17  ;;  %v564_v29 = vmul.f32 %v939_v16, %v524_v61  ;;  %556 = vst.msk [vmem:[#allocation2 + $0x40] sm:$0xff] %vm41_vm0, %v939_v16 }
 0x31a   :  { %v940_v30 = vadd.f32 -1.0, %v541_v18  ;;  %537 = vst.msk [vmem:[#allocation2 + $0x28] sm:$0xff] %vm41_vm0, %v529_v19  ;;  %v545_v31 = vmul.f32 %v529_v19, %v529_v19  ;;  %v530_v32 = vadd.f32 %v1282_v25, %v1282_v25  ;;  %v567_v33 = vmul.f32 %v1540_v24, %v527_v63  ;;  %559 = vst.msk [vmem:[#allocation2 + $0x58] sm:$0xff] %vm41_vm0, %v1540_v24 }
 0x31b   :  { %560 = vst.msk [vmem:[#allocation2 + $0x60] sm:$0xff] %vm41_vm0, %v943_v26  ;;  %v568_v34 = vmul.f32 %v943_v26, %v528_v2  ;;  %v941_v35 = vadd.f32 -1.0, %v542_v27  ;;  %539 = vst.msk [vmem:[#allocation2 + $0x38] sm:$0xff] %vm41_vm0, %v531_v28  ;;  %v547_v36 = vmul.f32 %v531_v28, %v531_v28  ;;  %v572_v37 = vsub.f32 %v564_v29, %v524_v61 }
 0x31c   :  { %557 = vst.msk [vmem:[#allocation2 + $0x48] sm:$0xff] %vm41_vm0, %v940_v30  ;;  %v565_v38 = vmul.f32 %v940_v30, %v525_v5  ;;  %v944_v39 = vadd.f32 -1.0, %v545_v31  ;;  %538 = vst.msk [vmem:[#allocation2 + $0x30] sm:$0xff] %vm41_vm0, %v530_v32  ;;  %v546_v40 = vmul.f32 %v530_v32, %v530_v32  ;;  %v575_v41 = vsub.f32 %v567_v33, %v527_v63 }
 0x31d   :  { %v576_v42 = vsub.f32 %v568_v34, %v528_v2  ;;  %558 = vst.msk [vmem:[#allocation2 + $0x50] sm:$0xff] %vm41_vm0, %v941_v35  ;;  %v566_v43 = vmul.f32 %v941_v35, %v526_v15  ;;  %v946_v44 = vadd.f32 -1.0, %v547_v36  ;;  %580 = vst.msk [vmem:[#allocation2 + $0x80] sm:$0xff] %vm41_vm0, %v572_v37  ;;  %v588_v45 = vmul.f32 %v572_v37, %v524_v61 }
 0x31e   :  { %v573_v46 = vsub.f32 %v565_v38, %v525_v5  ;;  %561 = vst.msk [vmem:[#allocation2 + $0x68] sm:$0xff] %vm41_vm0, %v944_v39  ;;  %v569_v47 = vmul.f32 %v944_v39, %v529_v19  ;;  %v945_v48 = vadd.f32 -1.0, %v546_v40  ;;  %583 = vst.msk [vmem:[#allocation2 + $0x98] sm:$0xff] %vm41_vm0, %v575_v41  ;;  %v591_v49 = vmul.f32 %v575_v41, %v527_v63  ;;  %v618_v63 = vld [vmem:[#allocation2] sm:$0xff] }
 0x31f   :  { %584 = vst.msk [vmem:[#allocation2 + $0xa0] sm:$0xff] %vm41_vm0, %v576_v42  ;;  %v592_v50 = vmul.f32 %v576_v42, %v528_v2  ;;  %v574_v51 = vsub.f32 %v566_v43, %v526_v15  ;;  %563 = vst.msk [vmem:[#allocation2 + $0x78] sm:$0xff] %vm41_vm0, %v946_v44  ;;  %v571_v52 = vmul.f32 %v946_v44, %v531_v28  ;;  %v619_v1 = vld [vmem:[#allocation2 + $0x8] sm:$0xff] }
 0x320   :  { %v596_v53 = vsub.f32 %v588_v45, %v939_v16  ;;  %581 = vst.msk [vmem:[#allocation2 + $0x88] sm:$0xff] %vm41_vm0, %v573_v46  ;;  %v589_v54 = vmul.f32 %v573_v46, %v525_v5  ;;  %v577_v6 = vsub.f32 %v569_v47, %v529_v19  ;;  %562 = vst.msk [vmem:[#allocation2 + $0x70] sm:$0xff] %vm41_vm0, %v945_v48  ;;  %v620_v14 = vld [vmem:[#allocation2 + $0x10] sm:$0xff]  ;;  %v626_v36 = vld [vmem:[#allocation2 + $0x40] sm:$0xff] }
 0x321   :  { %v570_v7 = vmul.f32 %v945_v48, %v530_v32  ;;  %v600_v9 = vsub.f32 %v592_v50, %v943_v26  ;;  %582 = vst.msk [vmem:[#allocation2 + $0x90] sm:$0xff] %vm41_vm0, %v574_v51  ;;  %v590_v11 = vmul.f32 %v574_v51, %v526_v15  ;;  %v579_v10 = vsub.f32 %v571_v52, %v531_v28  ;;  %v621_v15 = vld [vmem:[#allocation2 + $0x18] sm:$0xff]  ;;  %v623_v25 = vld [vmem:[#allocation2 + $0x28] sm:$0xff] }
 0x322   :  { %604 = vst.msk [vmem:[#allocation2 + $0xc0] sm:$0xff] %vm41_vm0, %v596_v53  ;;  %v597_v55 = vsub.f32 %v589_v54, %v940_v30  ;;  %585 = vst.msk [vmem:[#allocation2 + $0xa8] sm:$0xff] %vm41_vm0, %v577_v6  ;;  %v593_v21 = vmul.f32 %v577_v6, %v529_v19  ;;  %v599_v56 = vsub.f32 %v591_v49, %v1540_v24  ;;  %v622_v24 = vld [vmem:[#allocation2 + $0x20] sm:$0xff]  ;;  %v625_v31 = vld [vmem:[#allocation2 + $0x38] sm:$0xff] }
 0x323   :  { %v578_v0 = vsub.f32 %v570_v7, %v530_v32  ;;  %608 = vst.msk [vmem:[#allocation2 + $0xe0] sm:$0xff] %vm41_vm0, %v600_v9  ;;  %v598_v20 = vsub.f32 %v590_v11, %v941_v35  ;;  %587 = vst.msk [vmem:[#allocation2 + $0xb8] sm:$0xff] %vm41_vm0, %v579_v10  ;;  %v595_v57 = vmul.f32 %v579_v10, %v531_v28  ;;  %v624_v30 = vld [vmem:[#allocation2 + $0x30] sm:$0xff]  ;;  %v627_v37 = vld [vmem:[#allocation2 + $0x48] sm:$0xff] }
 0x324   :  { %605 = vst.msk [vmem:[#allocation2 + $0xc8] sm:$0xff] %vm41_vm0, %v597_v55  ;;  %v601_v58 = vsub.f32 %v593_v21, %v944_v39  ;;  %v634_v61 = vld [vmem:[#allocation2 + $0x80] sm:$0xff]  ;;  %607 = vst.msk [vmem:[#allocation2 + $0xd8] sm:$0xff] %vm41_vm0, %v599_v56  ;;  %v1189_v12 = vpack.c.bf16 %v619_v1, %v618_v63  ;;  %v1193_v18 = vpack.c.bf16 %v621_v15, %v620_v14  ;;  %v628_v42 = vld [vmem:[#allocation2 + $0x50] sm:$0xff]  ;;  %v1343_v63 = vmov 0.0625  }
 0x325   :  { %586 = vst.msk [vmem:[#allocation2 + $0xb0] sm:$0xff] %vm41_vm0, %v578_v0  ;;  %v594_v59 = vmul.f32 %v578_v0, %v530_v32  ;;  %606 = vst.msk [vmem:[#allocation2 + $0xd0] sm:$0xff] %vm41_vm0, %v598_v20  ;;  %v603_v60 = vsub.f32 %v595_v57, %v946_v44  ;;  %v637_v3 = vld [vmem:[#allocation2 + $0x98] sm:$0xff]  ;;  %v1197_v28 = vpack.c.bf16 %v623_v25, %v622_v24  ;;  %v631_v49 = vld [vmem:[#allocation2 + $0x68] sm:$0xff]  ;;  %v653_v20 = vpop.permute.xlu0 %652 }
 0x326   :  { %609 = vst.msk [vmem:[#allocation2 + $0xe8] sm:$0xff] %vm41_vm0, %v601_v58  ;;  %v638_v16 = vld [vmem:[#allocation2 + $0xa0] sm:$0xff]  ;;  %v1201_v34 = vpack.c.bf16 %v625_v31, %v624_v30  ;;  %v1205_v40 = vpack.c.bf16 %v627_v37, %v626_v36  ;;  %v629_v43 = vld [vmem:[#allocation2 + $0x58] sm:$0xff]  ;;  %v612_v9 = vld [vmem:[%s1603_s2] sm:$0xff]  ;;  %v658_v58 = vpop.permute.xlu1 %657 }
 0x327   :  { %v602_v62 = vsub.f32 %v594_v59, %v945_v48  ;;  %611 = vst.msk [vmem:[#allocation2 + $0xf8] sm:$0xff] %vm41_vm0, %v603_v60  ;;  %v635_v2 = vld [vmem:[#allocation2 + $0x88] sm:$0xff]  ;;  %v1209_v46 = vpack.c.bf16 %v629_v43, %v628_v42  ;;  %v630_v48 = vld [vmem:[#allocation2 + $0x60] sm:$0xff]  ;;  %v632_v54 = vld [vmem:[#allocation2 + $0x70] sm:$0xff] }
 0x328   :  { %v1187_v4 = vpack.c.bf16 %v635_v2, %v634_v61  ;;  %v636_v5 = vld [vmem:[#allocation2 + $0x90] sm:$0xff]  ;;  %v1213_v52 = vpack.c.bf16 %v631_v49, %v630_v48  ;;  %v633_v6 = vld [vmem:[#allocation2 + $0x78] sm:$0xff]  ;;  %v614_v10 = vld [vmem:[%s1603_s2 + $0x18] sm:$0xff] }
 0x329   :  { %610 = vst.msk [vmem:[#allocation2 + $0xf0] sm:$0xff] %vm41_vm0, %v602_v62  ;;  %v1191_v13 = vpack.c.bf16 %v637_v3, %v636_v5  ;;  %v639_v17 = vld [vmem:[#allocation2 + $0xa8] sm:$0xff]  ;;  %v642_v32 = vld [vmem:[#allocation2 + $0xc0] sm:$0xff]  ;;  %v1217_v7 = vpack.c.bf16 %v633_v6, %v632_v54  ;;  %v615_v11 = vld [vmem:[%s1603_s2 + $0x20] sm:$0xff]  ;;  %v900_v24 = vpop.permute.xlu0 %899  ;;  %s1344_s2 = smov [#allocation6]  }
 0x32a   :  { %1188 = vmatprep.subr.bf16.mxu0 %v1187_v4  ;;  %v1195_v19 = vpack.c.bf16 %v639_v17, %v638_v16  ;;  %v641_v27 = vld [vmem:[#allocation2 + $0xb8] sm:$0xff]  ;;  %v646_v44 = vld [vmem:[#allocation2 + $0xe0] sm:$0xff]  ;;  %s921_s17 = sshll.u32 %s1344_s2, 4  ;;  %s922_s17 = int_to_ptr.vmem [resolvable:$true] %s921_s17 }
 0x32b   :  { %1190 = vmatpush3.bf16.msra.mxu0 %v1189_v12  ;;  %v643_v33 = vld [vmem:[#allocation2 + $0xc8] sm:$0xff]  ;;  %v645_v39 = vld [vmem:[#allocation2 + $0xd8] sm:$0xff]  ;;  %s1307_s18 = scalar_lea.vmem %s922_s17, 256  ;;  %p1312_p9 = scmp.lt.s32.totalorder %s922_s17, %s922_s17 }
 0x32c   :  { %1192 = vmatprep.subr.bf16.mxu0 %v1191_v13  ;;  %v640_v26 = vld [vmem:[#allocation2 + $0xb0] sm:$0xff]  ;;  %v1203_v35 = vpack.c.bf16 %v643_v33, %v642_v32  ;;  %p1308_p8 = scmp.ne.s32.totalorder %s922_s17, %s1307_s18  ;;  %p1313_p10 = scmp.lt.s32.totalorder %s1307_s18, %s1307_s18 }
 0x32d   :  { %v1199_v29 = vpack.c.bf16 %v641_v27, %v640_v26  ;;  %v644_v38 = vld [vmem:[#allocation2 + $0xd0] sm:$0xff]  ;;  %v647_v45 = vld [vmem:[#allocation2 + $0xe8] sm:$0xff] }
 0x32e   :  { %v1207_v41 = vpack.c.bf16 %v645_v39, %v644_v38  ;;  %v1211_v47 = vpack.c.bf16 %v647_v45, %v646_v44  ;;  %v649_v51 = vld [vmem:[#allocation2 + $0xf8] sm:$0xff]  ;;  %p1314_p11 = por %p1313_p10, %p1312_p9 }
 0x32f   :  { %1194 = vmatpush3.bf16.msra.mxu0 %v1193_v18 }
 0x330   :  { %1196 = vmatprep.subr.bf16.mxu0 %v1195_v19  ;;  %v648_v50 = vld [vmem:[#allocation2 + $0xf0] sm:$0xff]  ;;  %p1315_p12 = pnand %p1314_p11, %p1308_p8 }
 0x331   :  { %v1215_v53 = vpack.c.bf16 %v649_v51, %v648_v50 }
 0x333   :  { %1198 = vmatpush3.bf16.msra.mxu0 %v1197_v28 }
 0x334   :  { %1200 = vmatprep.subr.bf16.mxu0 %v1199_v29 }
 0x337   :  { %1202 = vmatpush3.bf16.msra.mxu0 %v1201_v34 }
 0x338   :  { %1204 = vmatprep.subr.bf16.mxu0 %v1203_v35 }
 0x33b   :  { %1206 = vmatpush3.bf16.msra.mxu0 %v1205_v40 }
 0x33c   :  { %1208 = vmatprep.subr.bf16.mxu0 %v1207_v41 }
 0x33f   :  { %1210 = vmatpush3.bf16.msra.mxu0 %v1209_v46 }
 0x340   :  { %1212 = vmatprep.subr.bf16.mxu0 %v1211_v47 }
 0x343   :  { %1214 = vmatpush3.bf16.msra.mxu0 %v1213_v52 }
 0x344   :  { %1216 = vmatprep.subr.bf16.mxu0 %v1215_v53 }
 0x347   :  { %1218 = vmatpush3.bf16.msra.mxu0 %v1217_v7 }
 0x34a   :  { %725 = vmatmul.mubr.f32.vlgmr.msra.gmra.mrb[8].mxu0 %v612_v9 }
 0x34b   :  { %729 = vmatprep.mubr.f32.mxu0 %v615_v11 }
 0x34e   :  { %730 = vmatmul.mubr.f32.gmra.mrb[10].mxu0 %v614_v10 }
 0x41d   :  { %v1023_v55 = vpop.f32.mrb[8].mxu0 }
 0x41e   :  { %v1024_v21 = vpop.f32.mrb[9].mxu0 }
 0x41f   :  { %v1025_v0 = vadd.f32 %v1024_v21, %v1023_v55 }
 0x421   :  { %v1026_v57 = vpop.f32.mrb[10].mxu0  ;;  %v727_v60 = vadd.f32 %v1025_v0, %v653_v20 }
 0x422   :  { %v1027_v56 = vpop.f32.mrb[11].mxu0 }
 0x423   :  { %v1028_v59 = vadd.f32 %v1027_v56, %v1026_v57 }
 0x425   :  { %v732_v61 = vadd.f32 %v1028_v59, %v658_v58 }
 0x427   :  { %v1220_v62 = vpack.c.bf16 %v732_v61, %v727_v60 }
 0x429   :  { %1221 = vmatpush3.bf16.msra.mxu1 %v1220_v62 }
 0x42a   :  { %1222 = vmatprep.subr.bf16.mxu1 %v1337_v22  ;;  %v896_v22 = vpop.permute.xlu1 %895 }
 0x42c   :  { %1122 = vmatmul.mubr.msk.f32.vlgmr.msra.gmra.mrb[4].mxu1 %vm735_vm3, %v1343_v63 }
 0x42d   :  { %1128 = vmatprep.mubr.msk.f32.mxu1 %vm1338_vm1, %v1339_v23 }
 0x42e   :  { %v906_v19 = vpop.permute.xlu1 %905 }
 0x432   :  { %v910_v29 = vpop.permute.xlu1 %909 }
 0x4ff   :  { %v805_v1 = vpop.f32.mrb[4].mxu1 }
 0x500   :  { %v812_v2 = vrot.slane %v805_v1, %v1490_v8  ;;  %v1123_v3 = vpop.f32.mrb[5].mxu1 }
 0x502   :  { %v813_v4 = vsub.f32 %v727_v60, %v812_v2  ;;  %v814_v5 = vsub.f32 %v732_v61, %v812_v2 }
 0x504   :  { %v815_v12 = vmul.f32 %v813_v4, %v813_v4  ;;  %v816_v13 = vmul.f32 %v814_v5, %v814_v5 }
 0x506   :  { %v1223_v14 = vpack.c.bf16 %v816_v13, %v815_v12 }
 0x508   :  { %1224 = vmatpush3.bf16.msra.mxu1 %v1223_v14 }
 0x50b   :  { %1129 = vmatmul.mubr.msk.f32.vlgmr.msra.gmra.mrb[6].mxu1 %vm735_vm3, %v1343_v63 }
 0x5de   :  { %v883_v15 = vpop.f32.mrb[6].mxu1 }
 0x5df   :  { %v884_v16 = vadd.f32 1e-05, %v883_v15  ;;  %v1130_v17 = vpop.f32.mrb[7].mxu1 }
 0x5e1   :  { %1283 = vrsqrt.f32 %v884_v16 }
 0x5eb   :  { %v1284_v18 = vpop.eup %1283 }
 0x5ec   :  { %v891_v23 = vrot.slane %v1284_v18, %v1490_v8 }
 0x5ee   :  { %v892_v25 = vmul.f32 %v891_v23, %v813_v4  ;;  %v893_v26 = vmul.f32 %v891_v23, %v814_v5 }
 0x5f0   :  { %v902_v27 = vmul.f32 %v896_v22, %v892_v25  ;;  %v903_v28 = vmul.f32 %v900_v24, %v893_v26 }
 0x5f2   :  { %v912_v30 = vadd.f32 %v906_v19, %v902_v27  ;;  %v913_v31 = vadd.f32 %v910_v29, %v903_v28 }
 0x5f4   :  { %914 = vst.msk [vmem:[#allocation6] sm:$0xff] %vm41_vm0, %v912_v30  ;;  %915 = vst.msk [vmem:[#allocation6 + $0x8] sm:$0xff] %vm41_vm0, %v913_v31 }
 0x5f5   :  { %1318 = shalt.err (!%p1315_p12)
}
 0x5f6   :  { %s1319_s21 = scalar_lea.hbm %s1604_s3, 256 }
 0x5f7   :  { %p1320_p13 = scmp.ne.s32.totalorder %s1604_s3, %s1319_s21  ;;  %p1323_p0 = scmp.lt.u32.totalorder %s1319_s21, %s1604_s3 }
 0x5f9   :  { %p1325_p1 = pnand %p1323_p0, %p1320_p13 }
 0x5fb   :  { %1328 = shalt.err (!%p1325_p1)
}
 0x5fc   :  { %s1345_s26 = smov 128   ;;  %s1346_s27 = smov 8  }
 0x5fd   :  { %927 = dma.vmem_to_hbm [thread:$0]  %s922_s17, 256, %s1604_s3, [#allocation5], %s1345_s26, %s1345_s26, %s1346_s27  }
 0x5fe   :  { %1331 = dma.done.wait [#allocation5], 256  }
 0x5ff   :  { %1332 = vsyncadd [#allocation5], 4294967040 }
 0x600   :  { %931 = vsyncpa [#allocation4], 1 }
 0x601   :  { %932 = vsyncpa [#allocation5], 1 }

</bundles_post_ra>
